<compile_context>
chip_gen: v5e
topology: v5e:2x2
jax: 0.10.0
libtpu: 0.0.40
codegen_flags: <defaults>
</compile_context>

<pallas_src>
import jax
import jax.numpy as jnp
from jax.experimental import pallas as pl
from jax.experimental.pallas import tpu as pltpu


def _critic_kernel(x_ref, w1_ref, b1_ref, w2_ref, b2_ref, w3_ref, b3_ref, o_ref):
    # Layer 1: Linear(S -> H) + ReLU.  Operands already in matmul dtype
    # (pre-cast in the wrapper); accumulate in f32 on the MXU.
    h = jnp.dot(x_ref[...], w1_ref[...], preferred_element_type=jnp.float32)
    h = jnp.maximum(h + b1_ref[...], 0.0)

    # Layer 2: Linear(H -> H) + ReLU.  Single downcast of the f32 activation
    # to the weight dtype (no-op for f32 weights).
    h = jnp.dot(h.astype(w2_ref.dtype), w2_ref[...],
                preferred_element_type=jnp.float32)
    h = jnp.maximum(h + b2_ref[...], 0.0)

    # Layer 3: Linear(H -> 1) as elementwise mul + cross-lane sum.  VALU/XLU
    # slots are idle while the MXU runs the two matmuls above, so this is
    # effectively free and avoids a degenerate N=1 MXU matmul.
    q = jnp.sum(h * w3_ref[...], axis=-1, keepdims=True) + b3_ref[0]   # (tb, 1)
    o_ref[...] = q.astype(o_ref.dtype)


def _round_up(v, m):
    return -(-v // m) * m


def _pick_batch_tile(B, batch_tile):
    """Batch tile satisfying the (8, 128) block rules.

    Default policy: tiles up to 512 rows (amortizes the ~0.35us/step grid
    overhead on 128-MiB-VMEM chips) while keeping >= 2 grid steps whenever
    possible so the "parallel" batch axis can shard over v7x's two TCs.
    """
    if batch_tile is not None:
        tb = int(batch_tile)
        if tb >= B:
            return B                    # full-dim block: always legal
        tb = _round_up(tb, 128)         # keep sublane dim 8-aligned, MXU M 128-aligned
        return B if tb >= B else tb
    tb = min(512, _round_up(pl.cdiv(B, 2), 128))
    return B if tb >= B else tb


def critic_forward(x, params, *, batch_tile=None, matmul_dtype=jnp.float32,
                   x_buffer_count=None):
    """x: (B, state_dim). Returns (B, 1) f32."""
    w1, b1, w2, b2, w3, b3 = params
    B, S = x.shape
    H = w1.shape[1]
    md = jnp.dtype(matmul_dtype)

    # Pre-cast MXU operands once in the wrapper (no-ops when params/x are
    # already stored in matmul_dtype).  Biases / w3 / b3 stay f32.
    x = x if x.dtype == md else x.astype(md)
    w1 = w1 if w1.dtype == md else w1.astype(md)
    w2 = w2 if w2.dtype == md else w2.astype(md)
    b1 = b1 if b1.dtype == jnp.float32 else b1.astype(jnp.float32)
    b2 = b2 if b2.dtype == jnp.float32 else b2.astype(jnp.float32)
    w3 = w3 if w3.dtype == jnp.float32 else w3.astype(jnp.float32)
    b3 = b3 if b3.dtype == jnp.float32 else b3.astype(jnp.float32)

    tb = _pick_batch_tile(B, batch_tile)
    num_tiles = pl.cdiv(B, tb)
    grid = (num_tiles,)

    if x_buffer_count is None:
        # Layer-1-dominated shapes (S >> H) have little per-step compute to
        # hide the x DMA behind; use a 3-deep x pipeline there.
        x_buffer_count = 3 if S >= 4 * H else 2
    if num_tiles <= 2:
        x_buffer_count = 2

    # Grid-invariant operands: single-buffered (halves their VMEM footprint).
    def resident(shape):
        return pl.BlockSpec(shape, lambda i: (0,) * len(shape),
                            pipeline_mode=pl.Buffered(1))

    # Cost estimate for XLA scheduling around the custom call.
    flops = 2 * B * (S * H + H * H + H)
    bytes_accessed = int(x.size * x.dtype.itemsize
                         + w1.size * w1.dtype.itemsize
                         + w2.size * w2.dtype.itemsize
                         + 3 * H * 4 + B * 4)

    # VMEM budget: weights single-buffered + x pipeline + out double buffer +
    # f32 activations, with 2x headroom; clamped to 75% of physical VMEM so
    # the compiler keeps room for its own scratch (critical on v7x's 64 MiB).
    vmem_cap = 128 << 20
    try:
        vmem_cap = int(getattr(pltpu.get_tpu_info(), "vmem_capacity_bytes",
                               vmem_cap))
    except Exception:
        pass
    vmem_budget = max(16 << 20, (vmem_cap * 3) // 4)

    w_item = md.itemsize
    weight_bytes = (S * H + H * H) * w_item + 3 * H * 4
    io_bytes = x_buffer_count * tb * S * w_item + 2 * tb * 4
    act_bytes = 2 * tb * H * 4
    need = weight_bytes + io_bytes + act_bytes
    vmem_limit = int(min(max(2 * need, 16 << 20), vmem_budget))

    # NOTE: when B % tb != 0 the last x tile reads past the end of x; those
    # garbage rows flow through the MLP but their output rows are clipped by
    # the pipeline writeback, so this is benign -- do not "fix" it.
    out = pl.pallas_call(
        _critic_kernel,
        out_shape=jax.ShapeDtypeStruct((B, 1), jnp.float32),
        grid_spec=pltpu.PrefetchScalarGridSpec(
            num_scalar_prefetch=0,
            grid=grid,
            in_specs=[
                pl.BlockSpec((tb, S), lambda i: (i, 0),
                             pipeline_mode=pl.Buffered(x_buffer_count)),
                resident((S, H)),                          # w1
                resident((1, H)),                          # b1
                resident((H, H)),                          # w2
                resident((1, H)),                          # b2
                resident((1, H)),                          # w3 (row, f32)
                pl.BlockSpec(memory_space=pltpu.MemorySpace.SMEM),  # b3 scalar
            ],
            out_specs=pl.BlockSpec((tb, 1), lambda i: (i, 0)),
        ),
        compiler_params=pltpu.CompilerParams(
            dimension_semantics=("parallel",),
            vmem_limit_bytes=vmem_limit,
        ),
        cost_estimate=pl.CostEstimate(flops=flops, transcendentals=0,
                                      bytes_accessed=bytes_accessed),
    )(x, w1, b1, w2, b2, w3, b3)
    return out


def init_critic_params(key, state_dim, hidden_dim, dtype=jnp.float32):
    """Deterministic init mirroring nn.Linear (weights stored transposed).

    `dtype` is the storage dtype of the MXU weights (w1, w2); biases and the
    final row w3 stay f32 (they are VPU-side operands in the kernel).
    """
    ks = jax.random.split(key, 6)

    def linear(kw, kb, fan_in, fan_out):
        bound = 1.0 / jnp.sqrt(fan_in)
        w = jax.random.uniform(kw, (fan_in, fan_out), jnp.float32, -bound, bound)
        b = jax.random.uniform(kb, (1, fan_out), jnp.float32, -bound, bound)
        return w.astype(dtype), b

    w1, b1 = linear(ks[0], ks[1], state_dim, hidden_dim)
    w2, b2 = linear(ks[2], ks[3], hidden_dim, hidden_dim)
    w3t, b3t = linear(ks[4], ks[5], hidden_dim, 1)
    w3 = w3t.reshape(1, hidden_dim).astype(jnp.float32)  # final layer as a row
    b3 = b3t.reshape(1).astype(jnp.float32)              # scalar bias (SMEM)
    return (w1, b1, w2, b2, w3, b3)


def critic_reference(x, params):
    """Pure-JAX reference for correctness checks."""
    w1, b1, w2, b2, w3, b3 = params
    h = jnp.maximum(x.astype(jnp.float32) @ w1.astype(jnp.float32) + b1, 0.0)
    h = jnp.maximum(h @ w2.astype(jnp.float32) + b2, 0.0)
    return h @ w3.astype(jnp.float32).T + b3


if __name__ == "__main__":
    key = jax.random.PRNGKey(0)
    k_params, k_x, k_x2 = jax.random.split(key, 3)

    # Small shape (single grid step, full-dim tile).
    batch, state_dim, hidden_dim = 8, 16, 32
    params = init_critic_params(k_params, state_dim, hidden_dim)
    x = jax.random.normal(k_x, (batch, state_dim), jnp.float32)

    out = jax.block_until_ready(critic_forward(x, params))
    ref = critic_reference(x, params)
    assert out.shape == (batch, 1), out.shape
    assert jnp.allclose(out, ref, atol=1e-5, rtol=1e-5)

    # Larger, ragged batch: >=2 grid steps ("parallel" axis, megacore-shardable
    # on v7x), a partial final tile, and single-buffered resident weights.
    batch2 = 600
    x2 = jax.random.normal(k_x2, (batch2, state_dim), jnp.float32)
    out2 = jax.block_until_ready(critic_forward(x2, params))
    ref2 = critic_reference(x2, params)
    assert out2.shape == (batch2, 1), out2.shape
    assert jnp.allclose(out2, ref2, atol=1e-5, rtol=1e-5)

    # bf16 matmul path: weights stored in bf16 (wrapper casts are no-ops),
    # explicit small tile + 3-deep x pipeline; loose tolerance for bf16.
    params_bf16 = init_critic_params(k_params, state_dim, hidden_dim,
                                     dtype=jnp.bfloat16)
    out3 = jax.block_until_ready(
        critic_forward(x2, params_bf16, matmul_dtype=jnp.bfloat16,
                       batch_tile=128, x_buffer_count=3))
    ref3 = critic_reference(x2, params_bf16)
    assert out3.shape == (batch2, 1), out3.shape
    assert jnp.allclose(out3, ref3, atol=3e-2, rtol=3e-2)

    print("KERNEL_OK")
</pallas_src>

<mosaic_0001>
module attributes {stable_mosaic.version = 11 : i64} {
  func.func @_critic_kernel(%arg0: i32, %arg1: memref<8x16xf32, #tpu.memory_space<vmem>>, %arg2: memref<16x32xf32, #tpu.memory_space<vmem>>, %arg3: memref<1x32xf32, #tpu.memory_space<vmem>>, %arg4: memref<32x32xf32, #tpu.memory_space<vmem>>, %arg5: memref<1x32xf32, #tpu.memory_space<vmem>>, %arg6: memref<1x32xf32, #tpu.memory_space<vmem>>, %arg7: memref<1xf32, #tpu.memory_space<smem>>, %arg8: memref<8x1xf32, #tpu.memory_space<vmem>>) attributes {dimension_semantics = [#tpu.dimension_semantics<parallel>], iteration_bounds = array<i64: 1>, scalar_prefetch = 0 : i64, scratch_operands = 0 : i64, tpu.core_type = #tpu.core_type<tc>, window_params = [{pipeline_mode = #tpu.pipeline_mode<double_buffered>, transform_indices = @transform_0, window_bounds = array<i64: 8, 16>}, {pipeline_mode = #tpu.pipeline_mode<synchronous>, transform_indices = @transform_1, window_bounds = array<i64: 16, 32>}, {pipeline_mode = #tpu.pipeline_mode<synchronous>, transform_indices = @transform_2, window_bounds = array<i64: 1, 32>}, {pipeline_mode = #tpu.pipeline_mode<synchronous>, transform_indices = @transform_3, window_bounds = array<i64: 32, 32>}, {pipeline_mode = #tpu.pipeline_mode<synchronous>, transform_indices = @transform_4, window_bounds = array<i64: 1, 32>}, {pipeline_mode = #tpu.pipeline_mode<synchronous>, transform_indices = @transform_5, window_bounds = array<i64: 1, 32>}, {transform_indices = @transform_6, window_bounds = array<i64: 1>}, {transform_indices = @transform_7, window_bounds = array<i64: 8, 1>}]} {
    %c0 = arith.constant 0 : index
    %c0_0 = arith.constant 0 : index
    %0 = vector.load %arg1[%c0, %c0_0] : memref<8x16xf32, #tpu.memory_space<vmem>>, vector<8x16xf32>
    %c0_1 = arith.constant 0 : index
    %c0_2 = arith.constant 0 : index
    %1 = vector.load %arg2[%c0_1, %c0_2] : memref<16x32xf32, #tpu.memory_space<vmem>>, vector<16x32xf32>
    %cst = arith.constant dense<0.000000e+00> : vector<8x32xf32>
    %2 = tpu.matmul %0, %1, %cst {dimension_numbers = #tpu.dot_dimension_numbers<[1], [0], [0], [1], [0, 0, 1, 1], [], []>} : vector<8x16xf32>, vector<16x32xf32>, vector<8x32xf32> -> vector<8x32xf32>
    %c0_3 = arith.constant 0 : index
    %c0_4 = arith.constant 0 : index
    %3 = vector.load %arg3[%c0_3, %c0_4] : memref<1x32xf32, #tpu.memory_space<vmem>>, vector<1x32xf32>
    %4 = vector.broadcast %3 : vector<1x32xf32> to vector<8x32xf32>
    %5 = arith.addf %2, %4 : vector<8x32xf32>
    %cst_5 = arith.constant 0.000000e+00 : f32
    %6 = vector.broadcast %cst_5 : f32 to vector<8x32xf32>
    %7 = arith.maximumf %5, %6 : vector<8x32xf32>
    %c0_6 = arith.constant 0 : index
    %c0_7 = arith.constant 0 : index
    %8 = vector.load %arg4[%c0_6, %c0_7] : memref<32x32xf32, #tpu.memory_space<vmem>>, vector<32x32xf32>
    %cst_8 = arith.constant dense<0.000000e+00> : vector<8x32xf32>
    %9 = tpu.matmul %7, %8, %cst_8 {dimension_numbers = #tpu.dot_dimension_numbers<[1], [0], [0], [1], [0, 0, 1, 1], [], []>} : vector<8x32xf32>, vector<32x32xf32>, vector<8x32xf32> -> vector<8x32xf32>
    %c0_9 = arith.constant 0 : index
    %c0_10 = arith.constant 0 : index
    %10 = vector.load %arg5[%c0_9, %c0_10] : memref<1x32xf32, #tpu.memory_space<vmem>>, vector<1x32xf32>
    %11 = vector.broadcast %10 : vector<1x32xf32> to vector<8x32xf32>
    %12 = arith.addf %9, %11 : vector<8x32xf32>
    %cst_11 = arith.constant 0.000000e+00 : f32
    %13 = vector.broadcast %cst_11 : f32 to vector<8x32xf32>
    %14 = arith.maximumf %12, %13 : vector<8x32xf32>
    %c0_12 = arith.constant 0 : index
    %c0_13 = arith.constant 0 : index
    %15 = vector.load %arg6[%c0_12, %c0_13] : memref<1x32xf32, #tpu.memory_space<vmem>>, vector<1x32xf32>
    %16 = vector.broadcast %15 : vector<1x32xf32> to vector<8x32xf32>
    %17 = arith.mulf %14, %16 : vector<8x32xf32>
    %cst_14 = arith.constant dense<0.000000e+00> : vector<8xf32>
    %18 = vector.multi_reduction <add>, %17, %cst_14 [1] : vector<8x32xf32> to vector<8xf32>
    %19 = vector.shape_cast %18 : vector<8xf32> to vector<8x1xf32>
    %c0_15 = arith.constant 0 : index
    %20 = memref.load %arg7[%c0_15] : memref<1xf32, #tpu.memory_space<smem>>
    %21 = vector.broadcast %20 : f32 to vector<8x1xf32>
    %22 = arith.addf %19, %21 : vector<8x1xf32>
    %c0_16 = arith.constant 0 : index
    %c0_17 = arith.constant 0 : index
    %23 = vector.load %arg8[%c0_16, %c0_17] : memref<8x1xf32, #tpu.memory_space<vmem>>, vector<8x1xf32>
    tpu.vector_store %arg8[%c0_16, %c0_17], %22 {strides = array<i32>} : memref<8x1xf32, #tpu.memory_space<vmem>>, vector<8x1xf32>,
    return
  }
  func.func @transform_0(%arg0: i32) -> (i32, i32) {
    %c0_i32 = arith.constant 0 : i32
    %c0_i32_0 = arith.constant 0 : i32
    return %arg0, %c0_i32 : i32, i32
  }
  func.func @transform_1(%arg0: i32) -> (i32, i32) {
    %c0_i32 = arith.constant 0 : i32
    %c0_i32_0 = arith.constant 0 : i32
    %c0_i32_1 = arith.constant 0 : i32
    return %c0_i32, %c0_i32_0 : i32, i32
  }
  func.func @transform_2(%arg0: i32) -> (i32, i32) {
    %c0_i32 = arith.constant 0 : i32
    %c0_i32_0 = arith.constant 0 : i32
    %c0_i32_1 = arith.constant 0 : i32
    return %c0_i32, %c0_i32_0 : i32, i32
  }
  func.func @transform_3(%arg0: i32) -> (i32, i32) {
    %c0_i32 = arith.constant 0 : i32
    %c0_i32_0 = arith.constant 0 : i32
    %c0_i32_1 = arith.constant 0 : i32
    return %c0_i32, %c0_i32_0 : i32, i32
  }
  func.func @transform_4(%arg0: i32) -> (i32, i32) {
    %c0_i32 = arith.constant 0 : i32
    %c0_i32_0 = arith.constant 0 : i32
    %c0_i32_1 = arith.constant 0 : i32
    return %c0_i32, %c0_i32_0 : i32, i32
  }
  func.func @transform_5(%arg0: i32) -> (i32, i32) {
    %c0_i32 = arith.constant 0 : i32
    %c0_i32_0 = arith.constant 0 : i32
    %c0_i32_1 = arith.constant 0 : i32
    return %c0_i32, %c0_i32_0 : i32, i32
  }
  func.func @transform_6(%arg0: i32) -> i32 {
    %c0_i32 = arith.constant 0 : i32
    %c0_i32_0 = arith.constant 0 : i32
    return %c0_i32 : i32
  }
  func.func @transform_7(%arg0: i32) -> (i32, i32) {
    %c0_i32 = arith.constant 0 : i32
    %c0_i32_0 = arith.constant 0 : i32
    return %arg0, %c0_i32 : i32, i32
  }
}

</mosaic_0001>

<bundles_post_ra>
// kernel: tpu_custom_call.1
= control target key start
LH: loop header
LB: loop body
LE: loop exit
PB: predicated region body
PF: predicated region fallthrough
CT: control target
= control target key end

     0   :  { %13 = vsyncpa [#allocation4], 0  ;;  %s311_s0 = inlined_call_operand.hbm [shape: f32[8,16], index: 0, kind: input, shape index: {}]   ;;  %s312_s1 = inlined_call_operand.hbm [shape: f32[16,32], index: 1, kind: input, shape index: {}]   ;;  %s313_s2 = inlined_call_operand.vmem [shape: f32[1,32], index: 2, kind: input, shape index: {}]   ;;  %s314_s3 = inlined_call_operand.hbm [shape: f32[32,32], index: 3, kind: input, shape index: {}]   ;;  %s315_s4 = inlined_call_operand.vmem [shape: f32[1,32], index: 4, kind: input, shape index: {}]   ;;  %s316_s5 = inlined_call_operand.vmem [shape: f32[1,32], index: 5, kind: input, shape index: {}]   ;;  %s317_s6 = inlined_call_operand.<no memory space> [shape: f32[1], index: 6, kind: input, shape index: {}]   ;;  %s318_s7 = inlined_call_operand.vmem [shape: f32[8,1], index: 7, kind: output, shape index: {}]  }
   0x1   :  { %14 = vsyncpa [#allocation6], 0  ;;  %s30_s26 = sshll.u32 %s312_s1, 4  ;;  %s242_s27 = smov [#allocation5]   ;;  %s31_s26 = int_to_ptr.hbm [resolvable:$true] %s30_s26 }
   0x2   :  { %s32_s28 = sshll.u32 %s242_s27, 4  ;;  %s20_s8 = sshll.u32 %s311_s0, 4  ;;  %s33_s28 = int_to_ptr.vmem [resolvable:$true] %s32_s28  ;;  %s21_s8 = int_to_ptr.hbm [resolvable:$true] %s20_s8 }
   0x3   :  { %s243_s9 = smov 128   ;;  %s244_s10 = smov 8  }
   0x4   :  { %38 = dma.hbm_to_vmem [thread:$0]  %s31_s26, 256, %s33_s28, [#allocation6], %s243_s9, %s243_s9, %s244_s10  }
   0x5   :  { %s245_s11 = smov [#allocation3]   ;;  %s45_s15 = sshll.u32 %s314_s3, 4  ;;  %s46_s15 = int_to_ptr.hbm [resolvable:$true] %s45_s15 }
   0x6   :  { %s22_s12 = sshll.u32 %s245_s11, 4  ;;  %s246_s1 = smov [#allocation7]   ;;  %s23_s12 = int_to_ptr.vmem [resolvable:$true] %s22_s12 }
   0x7   :  { %25 = dma.hbm_to_vmem [thread:$0]  %s21_s8, 128, %s23_s12, [#allocation4]  }
   0x8   :  { %s47_s16 = sshll.u32 %s246_s1, 4  ;;  %s48_s16 = int_to_ptr.vmem [resolvable:$true] %s47_s16 }
   0x9   :  { %53 = dma.hbm_to_vmem [thread:$0]  %s46_s15, 512, %s48_s16, [#allocation6], %s243_s9, %s243_s9, %s244_s10  }
   0xa   :  { %238 = dma.done.wait [#allocation4], 128  }
   0xb   :  { %239 = vsyncadd [#allocation4], 4294967168 }
   0xc   :  { %240 = dma.done.wait [#allocation6], 768  }
   0xd   :  { %241 = vsyncadd [#allocation6], 4294966528  ;;  %v74_v0 = vld [vmem:[#allocation5 + $0x8] sm:$0xff]  ;;  %v73_v1 = vld [vmem:[#allocation5] sm:$0xff]  ;;  %vm79_vm0 = vcmask 130048   ;;  %vm112_vm1 = vcmask 261120   ;;  %v146_v18 = vstv %s317_s6 }
   0xe   :  { %97 = vmatpush.msra.mxu0 %v74_v0  ;;  %v72_v2 = vld [vmem:[#allocation3] sm:$0xff]  ;;  %v107_v3 = vld [vmem:[#allocation7 + $0x18] sm:$0xff]  ;;  %v106_v4 = vld [vmem:[#allocation7 + $0x10] sm:$0xff]  ;;  %vm148_vm2 = vcmask 7168  }
   0xf   :  { %128 = vmatpush.msra.mxu1 %v107_v3  ;;  %v105_v5 = vld [vmem:[#allocation7 + $0x8] sm:$0xff]  ;;  %v104_v6 = vld [vmem:[#allocation7] sm:$0xff] }
  0x10   :  { %98 = vmatpush.msra.mxu0 %v73_v1  ;;  %v163_v7 = vld [vmem:[%s313_s2] ss:$0 sm:$0xff] }
  0x11   :  { %156 = vmatmul.msk.f32.vlgmr.msra.gmra.mxu0 %vm79_vm0, %v72_v2  ;;  %129 = vmatpush.msra.mxu1 %v106_v4  ;;  %v164_v11 = vld [vmem:[%s315_s4] ss:$0 sm:$0xff] }
  0x12   :  { %v165_v14 = vld [vmem:[%s316_s5] ss:$0 sm:$0xff] }
  0x13   :  { %130 = vmatpush.msra.mxu1 %v105_v5 }
  0x15   :  { %131 = vmatpush.msra.mxu1 %v104_v6 }
  0x8e   :  { %v100_v8 = vpop.f32.mrf.mxu0 }
  0x8f   :  { %v101_v9 = vadd.f32 %v163_v7, %v100_v8 }
  0x91   :  { %v103_v10 = vmax.f32 %v101_v9, 0.0 }
  0x93   :  { %157 = vmatmul.msk.f32.vlgmr.msra.gmra.mxu1 %vm112_vm1, %v103_v10 }
 0x110   :  { %v133_v12 = vpop.f32.mrf.mxu1 }
 0x111   :  { %v134_v13 = vadd.f32 %v164_v11, %v133_v12 }
 0x113   :  { %v136_v15 = vmax.f32 %v134_v13, 0.0 }
 0x115   :  { %v141_v16 = vmul.f32 %v165_v14, %v136_v15 }
 0x117   :  { %v142_v17 = vsel %vm112_vm1, %v141_v16, 0.0 }
 0x118   :  { %143 = vadd.xlane.f32.xlu0 %v142_v17 }
 0x18b   :  { %v144_v19 = vpop.xlane.xlu0 %143 }
 0x18c   :  { %v147_v20 = vadd.f32 %v146_v18, %v144_v19 }
 0x18e   :  { %149 = vst.msk [vmem:[%s318_s7] sm:$0xff] %vm148_vm2, %v147_v20 }
 0x18f   :  { %154 = vsyncpa [#allocation4], 1 }
 0x190   :  { %155 = vsyncpa [#allocation6], 1 }

</bundles_post_ra>
